<compile_context>
chip_gen: v7x
topology: tpu7x:2x2x1
jax: 0.10.0
libtpu: 0.0.40
codegen_flags: <defaults>
</compile_context>

<pallas_src>
import jax
import jax.numpy as jnp
from jax.experimental import pallas as pl
from jax.experimental.pallas import tpu as pltpu

BN_EPS = 1e-5
NEG_SLOPE = 0.01


# ----------------------------- small helpers --------------------------------
def _round_up(n, m):
    return ((n + m - 1) // m) * m


def _leaky_relu(x):
    return jnp.where(x >= 0, x, NEG_SLOPE * x)


def _row_mask(tb, b_true, tile_idx, tile_rows):
    row = jax.lax.broadcasted_iota(jnp.int32, (tb, 1), 0) + tile_idx * tile_rows
    return (row < b_true).astype(jnp.float32)


def _dropout(a, p_drop, row_offset, seed):
    """Inverted dropout with a counter-based integer hash PRNG (no pltpu.prng_* needed)."""
    keep = 1.0 - p_drop
    thr = jnp.uint32(min(int(keep * 4294967296.0), 0xFFFFFFFF))
    n_col = a.shape[1]
    rows = jax.lax.broadcasted_iota(jnp.int32, a.shape, 0)
    cols = jax.lax.broadcasted_iota(jnp.int32, a.shape, 1)
    x = ((rows + row_offset) * n_col + cols).astype(jnp.uint32)
    x = x + jnp.uint32(seed & 0xFFFFFFFF)
    # splitmix32-style mix (uint32 xor / logical-shift / wrap-around multiply)
    x = (x ^ (x >> jnp.uint32(16))) * jnp.uint32(0x7FEB352D)
    x = (x ^ (x >> jnp.uint32(15))) * jnp.uint32(0x846CA68B)
    x = x ^ (x >> jnp.uint32(16))
    return jnp.where(x < thr, a * (1.0 / keep), 0.0)


def _default_vmem_limit():
    """Raise the VMEM limit on 128-MiB parts; conservative fallback otherwise."""
    try:
        cap = int(pltpu.get_tpu_info().vmem_capacity_bytes)
        return max(32 * 1024 * 1024, min(cap * 3 // 4, 100 * 1024 * 1024))
    except Exception:
        return 32 * 1024 * 1024


def _pick_tile(b_pad, base, cap=2048):
    """Largest multiple of `base` that divides b_pad and is <= cap."""
    best = base
    k = 2
    while base * k <= min(cap, b_pad):
        if b_pad % (base * k) == 0:
            best = base * k
        k += 1
    return best


# ----------------------------- kernels --------------------------------------
def _make_fc1_kernel(tb, b_true, b_pad):
    need_mask = b_pad != b_true

    def kernel(x_ref, w_ref, h_ref, s_ref, ss_ref):
        i = pl.program_id(0)
        # bf16 cast happens in-kernel (x arrives f32 straight from HBM)
        h = jnp.dot(x_ref[...].astype(jnp.bfloat16), w_ref[...],
                    preferred_element_type=jnp.float32)
        h_ref[...] = h.astype(jnp.bfloat16)
        hm = h * _row_mask(tb, b_true, i, tb) if need_mask else h
        hdim = h.shape[1]
        s_ref[...] = jnp.sum(hm, axis=0).reshape(1, 1, hdim)
        ss_ref[...] = jnp.sum(hm * hm, axis=0).reshape(1, 1, hdim)

    return kernel


def _make_hidden_kernel(tb, b_true, b_pad, p_drop, seed):
    need_mask = b_pad != b_true

    def kernel(h_in_ref, scale_ref, shift_ref, w_ref, h_out_ref, s_ref, ss_ref):
        i = pl.program_id(0)
        a = _leaky_relu(h_in_ref[...].astype(jnp.float32) * scale_ref[...] + shift_ref[...])
        if p_drop > 0.0:
            a = _dropout(a, p_drop, i * tb, seed)
        h = jnp.dot(a.astype(jnp.bfloat16), w_ref[...],
                    preferred_element_type=jnp.float32)
        h_out_ref[...] = h.astype(jnp.bfloat16)
        hm = h * _row_mask(tb, b_true, i, tb) if need_mask else h
        hdim = h.shape[1]
        s_ref[...] = jnp.sum(hm, axis=0).reshape(1, 1, hdim)
        ss_ref[...] = jnp.sum(hm * hm, axis=0).reshape(1, 1, hdim)

    return kernel


def _make_out_kernel(tb, p_drop, seed):
    def kernel(h_in_ref, scale_ref, shift_ref, w_ref, b_ref, o_ref):
        i = pl.program_id(0)
        a = _leaky_relu(h_in_ref[...].astype(jnp.float32) * scale_ref[...] + shift_ref[...])
        if p_drop > 0.0:
            a = _dropout(a, p_drop, i * tb, seed)
        out = jnp.dot(a.astype(jnp.bfloat16), w_ref[...],
                      preferred_element_type=jnp.float32) + b_ref[...]
        o_ref[...] = out.astype(o_ref.dtype)

    return kernel


# ----------------------------- wrapper --------------------------------------
def _bn_scale_shift(s_sum, ss_sum, b_true, gamma, beta):
    mean = s_sum / b_true
    var = jnp.maximum(ss_sum / b_true - mean * mean, 0.0)   # biased batch variance
    scale = gamma * jax.lax.rsqrt(var + BN_EPS)
    shift = beta - mean * scale
    h = gamma.shape[0]
    return (scale.reshape(1, h).astype(jnp.float32),
            shift.reshape(1, h).astype(jnp.float32))


def nonlinear_classifier_forward(x, params, *, dropout_p=0.0, rng_seed=0, tb=None):
    """Forward of NonLinearClassifier (training-mode BN; dropout active iff dropout_p>0)."""
    w1 = params["w1"]
    g1, be1 = params["gamma1"], params["beta1"]
    w2 = params["w2"]
    g2, be2 = params["gamma2"], params["beta2"]
    w3, b3 = params["w3"], params["b3"]
    # NOTE: b1 / b2 are intentionally not used: a Linear bias feeding training-mode
    # BatchNorm cancels exactly in the normalization.

    B, dim_in = x.shape
    H1 = w1.shape[0]            # 256
    H2 = w2.shape[0]            # 128
    n_label = w3.shape[0]

    vmem_limit = _default_vmem_limit()

    # ---- batch tiling -------------------------------------------------------
    # TODO(synk): single-buffer the constant weight blocks (pipeline_mode=pl.Buffered(1)) and
    # add a K grid axis with a VMEM accumulator for very large dim_in on v7x (64 MiB VMEM).
    if tb is None:
        tb = 512
        while tb > 64 and (2 * tb * dim_in * 4          # x tile, f32, double-buffered
                           + 2 * dim_in * H1 * 2        # w1t, bf16, double-buffered
                           + 2 * tb * H1 * 2) > vmem_limit // 2:
            tb //= 2
    tb = max(8, _round_up(min(tb, _round_up(B, 8)), 8))
    B_pad = _round_up(B, tb)
    n1 = B_pad // tb

    # passes 2/3 have a tiny per-row footprint -> use a larger batch tile (fewer grid steps)
    tb2 = _pick_tile(B_pad, tb, cap=2048)
    n2 = B_pad // tb2

    x_p = x.astype(jnp.float32)
    if B_pad != B:
        x_p = jnp.pad(x_p, ((0, B_pad - B), (0, 0)))

    # lane-dense final store: pad n_label up to a multiple of 128
    n_pad = _round_up(max(n_label, 128), 128)
    w3_p = jnp.pad(w3, ((0, n_pad - n_label), (0, 0))) if n_pad != n_label else w3
    b3_p = jnp.pad(b3, ((0, n_pad - n_label),)) if n_pad != n_label else b3

    # one-time wrapper-side transposes to (K, N) so kernels do plain A @ W dots
    w1t = w1.T.astype(jnp.bfloat16)      # (dim_in, H1)
    w2t = w2.T.astype(jnp.bfloat16)      # (H1, H2)
    w3t = w3_p.T.astype(jnp.bfloat16)    # (H2, n_pad)
    b3_2d = b3_p.reshape(1, n_pad).astype(jnp.float32)

    seed = int(rng_seed) & 0x7FFFFFFF

    # ---- pass 1: fc1 (+ per-tile BN1 sum / sumsq) ---------------------------
    h1, s1, ss1 = pl.pallas_call(
        _make_fc1_kernel(tb, B, B_pad),
        grid=(n1,),
        in_specs=[
            pl.BlockSpec((tb, dim_in), lambda i: (i, 0)),
            pl.BlockSpec((dim_in, H1), lambda i: (0, 0)),
        ],
        out_specs=[
            pl.BlockSpec((tb, H1), lambda i: (i, 0)),
            pl.BlockSpec((1, 1, H1), lambda i: (i, 0, 0)),
            pl.BlockSpec((1, 1, H1), lambda i: (i, 0, 0)),
        ],
        out_shape=[
            jax.ShapeDtypeStruct((B_pad, H1), jnp.bfloat16),
            jax.ShapeDtypeStruct((n1, 1, H1), jnp.float32),
            jax.ShapeDtypeStruct((n1, 1, H1), jnp.float32),
        ],
        compiler_params=pltpu.CompilerParams(
            dimension_semantics=("parallel",), vmem_limit_bytes=vmem_limit),
        cost_estimate=pl.CostEstimate(
            flops=2 * B_pad * dim_in * H1, transcendentals=0,
            bytes_accessed=B_pad * dim_in * 4 + dim_in * H1 * 2 + B_pad * H1 * 2),
    )(x_p, w1t)

    scale1, shift1 = _bn_scale_shift(jnp.sum(s1, axis=(0, 1)), jnp.sum(ss1, axis=(0, 1)),
                                     B, g1, be1)

    # ---- pass 2: BN1-apply + LeakyReLU + Dropout + fc2 (+ BN2 partial stats) ----
    # TODO(synk): optionally fuse passes 1+2 (h1 resident in VMEM scratch) when B_pad*H1*2 fits.
    h2, s2, ss2 = pl.pallas_call(
        _make_hidden_kernel(tb2, B, B_pad, float(dropout_p), seed),
        grid=(n2,),
        in_specs=[
            pl.BlockSpec((tb2, H1), lambda i: (i, 0)),
            pl.BlockSpec((1, H1), lambda i: (0, 0)),
            pl.BlockSpec((1, H1), lambda i: (0, 0)),
            pl.BlockSpec((H1, H2), lambda i: (0, 0)),
        ],
        out_specs=[
            pl.BlockSpec((tb2, H2), lambda i: (i, 0)),
            pl.BlockSpec((1, 1, H2), lambda i: (i, 0, 0)),
            pl.BlockSpec((1, 1, H2), lambda i: (i, 0, 0)),
        ],
        out_shape=[
            jax.ShapeDtypeStruct((B_pad, H2), jnp.bfloat16),
            jax.ShapeDtypeStruct((n2, 1, H2), jnp.float32),
            jax.ShapeDtypeStruct((n2, 1, H2), jnp.float32),
        ],
        compiler_params=pltpu.CompilerParams(
            dimension_semantics=("parallel",), vmem_limit_bytes=vmem_limit),
        cost_estimate=pl.CostEstimate(
            flops=2 * B_pad * H1 * H2 + 8 * B_pad * H1, transcendentals=0,
            bytes_accessed=B_pad * H1 * 2 + H1 * H2 * 2 + B_pad * H2 * 2),
    )(h1, scale1, shift1, w2t)

    scale2, shift2 = _bn_scale_shift(jnp.sum(s2, axis=(0, 1)), jnp.sum(ss2, axis=(0, 1)),
                                     B, g2, be2)

    # ---- pass 3: BN2-apply + LeakyReLU + Dropout + fc3 ----------------------
    out_pad = pl.pallas_call(
        _make_out_kernel(tb2, float(dropout_p), seed + 0x632BE5AB),
        grid=(n2,),
        in_specs=[
            pl.BlockSpec((tb2, H2), lambda i: (i, 0)),
            pl.BlockSpec((1, H2), lambda i: (0, 0)),
            pl.BlockSpec((1, H2), lambda i: (0, 0)),
            pl.BlockSpec((H2, n_pad), lambda i: (0, 0)),
            pl.BlockSpec((1, n_pad), lambda i: (0, 0)),
        ],
        out_specs=pl.BlockSpec((tb2, n_pad), lambda i: (i, 0)),
        out_shape=jax.ShapeDtypeStruct((B_pad, n_pad), jnp.float32),
        compiler_params=pltpu.CompilerParams(
            dimension_semantics=("parallel",), vmem_limit_bytes=vmem_limit),
        cost_estimate=pl.CostEstimate(
            flops=2 * B_pad * H2 * n_pad + 8 * B_pad * H2, transcendentals=0,
            bytes_accessed=B_pad * H2 * 2 + H2 * n_pad * 2 + B_pad * n_pad * 4),
    )(h2, scale2, shift2, w3t, b3_2d)

    return out_pad[:B, :n_label]


# ----------------------------- init & references -----------------------------
def init_params(key, dim_in, n_label=10, h1=256, h2=128):
    ks = jax.random.split(key, 6)
    lim1, lim2, lim3 = 1.0 / dim_in ** 0.5, 1.0 / h1 ** 0.5, 1.0 / h2 ** 0.5
    return {
        "w1": jax.random.uniform(ks[0], (h1, dim_in), jnp.float32, -lim1, lim1),
        "b1": jax.random.uniform(ks[1], (h1,), jnp.float32, -lim1, lim1),
        "gamma1": jnp.ones((h1,), jnp.float32), "beta1": jnp.zeros((h1,), jnp.float32),
        "w2": jax.random.uniform(ks[2], (h2, h1), jnp.float32, -lim2, lim2),
        "b2": jax.random.uniform(ks[3], (h2,), jnp.float32, -lim2, lim2),
        "gamma2": jnp.ones((h2,), jnp.float32), "beta2": jnp.zeros((h2,), jnp.float32),
        "w3": jax.random.uniform(ks[4], (n_label, h2), jnp.float32, -lim3, lim3),
        "b3": jax.random.uniform(ks[5], (n_label,), jnp.float32, -lim3, lim3),
    }


def _reference_f32(x, prm):
    """Pure f32 PyTorch-semantics reference (training-mode BN, dropout disabled)."""
    def bn(h, gamma, beta):
        mean = jnp.mean(h, axis=0, keepdims=True)
        var = jnp.mean((h - mean) ** 2, axis=0, keepdims=True)
        return (h - mean) * jax.lax.rsqrt(var + BN_EPS) * gamma + beta

    h = x @ prm["w1"].T + prm["b1"]
    h = _leaky_relu(bn(h, prm["gamma1"], prm["beta1"]))
    h = h @ prm["w2"].T + prm["b2"]
    h = _leaky_relu(bn(h, prm["gamma2"], prm["beta2"]))
    return h @ prm["w3"].T + prm["b3"]


def _reference_emulated(x, prm):
    """Mirrors the kernel arithmetic: bias-free pre-BN linears (equivalent), bf16 MXU inputs,
    bf16 intermediate activations, E[x^2]-E[x]^2 batch statistics."""
    def mm(a, w_t):
        return jnp.dot(a.astype(jnp.bfloat16), w_t.astype(jnp.bfloat16),
                       preferred_element_type=jnp.float32)

    def bn_apply(h_f32, gamma, beta):
        mean = jnp.mean(h_f32, axis=0)
        var = jnp.maximum(jnp.mean(h_f32 * h_f32, axis=0) - mean * mean, 0.0)
        scale = gamma * jax.lax.rsqrt(var + BN_EPS)
        shift = beta - mean * scale
        h_bf = h_f32.astype(jnp.bfloat16).astype(jnp.float32)
        return _leaky_relu(h_bf * scale + shift)

    h1 = mm(x, prm["w1"].T)
    a1 = bn_apply(h1, prm["gamma1"], prm["beta1"])
    h2 = mm(a1, prm["w2"].T)
    a2 = bn_apply(h2, prm["gamma2"], prm["beta2"])
    return mm(a2, prm["w3"].T) + prm["b3"]


if __name__ == "__main__":
    key = jax.random.PRNGKey(0)
    kx, kp = jax.random.split(key)

    B, dim_in, n_label = 8, 32, 10
    x = jax.random.normal(kx, (B, dim_in), dtype=jnp.float32)
    params = init_params(kp, dim_in, n_label)

    # Deterministic run (dropout off) for verification.
    out = jax.block_until_ready(nonlinear_classifier_forward(x, params, dropout_p=0.0))
    assert out.shape == (B, n_label)

    ref_emu = _reference_emulated(x, params)   # same arithmetic as the kernels
    ref_f32 = _reference_f32(x, params)        # pure f32 PyTorch semantics
    assert jnp.allclose(out, ref_emu, atol=2e-2, rtol=2e-2), "mismatch vs bf16-emulated reference"
    assert jnp.allclose(out, ref_f32, atol=1.5e-1, rtol=1.5e-1), "mismatch vs f32 reference"

    # Exercise the training-mode dropout path (stochastic; shape / finiteness check only).
    out_drop = jax.block_until_ready(
        nonlinear_classifier_forward(x, params, dropout_p=0.1, rng_seed=123))
    assert out_drop.shape == (B, n_label)
    assert bool(jnp.all(jnp.isfinite(out_drop)))

    print("KERNEL_OK")
</pallas_src>

<mosaic_0001>
module attributes {stable_mosaic.version = 11 : i64} {
  func.func @kernel(%arg0: i32, %arg1: memref<8x32xf32, #tpu.memory_space<vmem>>, %arg2: memref<32x256xbf16, #tpu.memory_space<vmem>>, %arg3: memref<8x256xbf16, #tpu.memory_space<vmem>>, %arg4: memref<1x1x256xf32, #tpu.memory_space<vmem>>, %arg5: memref<1x1x256xf32, #tpu.memory_space<vmem>>) attributes {dimension_semantics = [#tpu.dimension_semantics<parallel>], iteration_bounds = array<i64: 1>, scalar_prefetch = 0 : i64, scratch_operands = 0 : i64, tpu.core_type = #tpu.core_type<tc>, window_params = [{transform_indices = @transform_0, window_bounds = array<i64: 8, 32>}, {pipeline_mode = #tpu.pipeline_mode<synchronous>, transform_indices = @transform_1, window_bounds = array<i64: 32, 256>}, {transform_indices = @transform_2, window_bounds = array<i64: 8, 256>}, {transform_indices = @transform_3, window_bounds = array<i64: 1, 1, 256>}, {transform_indices = @transform_4, window_bounds = array<i64: 1, 1, 256>}]} {
    %c0 = arith.constant 0 : index
    %c0_0 = arith.constant 0 : index
    %0 = vector.load %arg1[%c0, %c0_0] : memref<8x32xf32, #tpu.memory_space<vmem>>, vector<8x32xf32>
    %1 = arith.truncf %0 : vector<8x32xf32> to vector<8x32xbf16>
    %c0_1 = arith.constant 0 : index
    %c0_2 = arith.constant 0 : index
    %2 = vector.load %arg2[%c0_1, %c0_2] : memref<32x256xbf16, #tpu.memory_space<vmem>>, vector<32x256xbf16>
    %cst = arith.constant dense<0.000000e+00> : vector<8x256xf32>
    %3 = tpu.matmul %1, %2, %cst {dimension_numbers = #tpu.dot_dimension_numbers<[1], [0], [0], [1], [0, 0, 1, 1], [], []>} : vector<8x32xbf16>, vector<32x256xbf16>, vector<8x256xf32> -> vector<8x256xf32>
    %4 = arith.truncf %3 : vector<8x256xf32> to vector<8x256xbf16>
    %c0_3 = arith.constant 0 : index
    %c0_4 = arith.constant 0 : index
    %5 = vector.load %arg3[%c0_3, %c0_4] : memref<8x256xbf16, #tpu.memory_space<vmem>>, vector<8x256xbf16>
    tpu.vector_store %arg3[%c0_3, %c0_4], %4 {strides = array<i32>} : memref<8x256xbf16, #tpu.memory_space<vmem>>, vector<8x256xbf16>,
    %cst_5 = arith.constant dense<0.000000e+00> : vector<256xf32>
    %6 = vector.multi_reduction <add>, %3, %cst_5 [0] : vector<8x256xf32> to vector<256xf32>
    %7 = vector.shape_cast %6 : vector<256xf32> to vector<1x1x256xf32>
    %c0_6 = arith.constant 0 : index
    %c0_7 = arith.constant 0 : index
    %c0_8 = arith.constant 0 : index
    %8 = vector.load %arg4[%c0_6, %c0_7, %c0_8] : memref<1x1x256xf32, #tpu.memory_space<vmem>>, vector<1x1x256xf32>
    tpu.vector_store %arg4[%c0_6, %c0_7, %c0_8], %7 {strides = array<i32>} : memref<1x1x256xf32, #tpu.memory_space<vmem>>, vector<1x1x256xf32>,
    %9 = arith.mulf %3, %3 : vector<8x256xf32>
    %cst_9 = arith.constant dense<0.000000e+00> : vector<256xf32>
    %10 = vector.multi_reduction <add>, %9, %cst_9 [0] : vector<8x256xf32> to vector<256xf32>
    %11 = vector.shape_cast %10 : vector<256xf32> to vector<1x1x256xf32>
    %c0_10 = arith.constant 0 : index
    %c0_11 = arith.constant 0 : index
    %c0_12 = arith.constant 0 : index
    %12 = vector.load %arg5[%c0_10, %c0_11, %c0_12] : memref<1x1x256xf32, #tpu.memory_space<vmem>>, vector<1x1x256xf32>
    tpu.vector_store %arg5[%c0_10, %c0_11, %c0_12], %11 {strides = array<i32>} : memref<1x1x256xf32, #tpu.memory_space<vmem>>, vector<1x1x256xf32>,
    return
  }
  func.func @transform_0(%arg0: i32) -> (i32, i32) {
    %c0_i32 = arith.constant 0 : i32
    %c0_i32_0 = arith.constant 0 : i32
    return %arg0, %c0_i32 : i32, i32
  }
  func.func @transform_1(%arg0: i32) -> (i32, i32) {
    %c0_i32 = arith.constant 0 : i32
    %c0_i32_0 = arith.constant 0 : i32
    %c0_i32_1 = arith.constant 0 : i32
    return %c0_i32, %c0_i32_0 : i32, i32
  }
  func.func @transform_2(%arg0: i32) -> (i32, i32) {
    %c0_i32 = arith.constant 0 : i32
    %c0_i32_0 = arith.constant 0 : i32
    return %arg0, %c0_i32 : i32, i32
  }
  func.func @transform_3(%arg0: i32) -> (i32, i32, i32) {
    %c0_i32 = arith.constant 0 : i32
    %c0_i32_0 = arith.constant 0 : i32
    %c0_i32_1 = arith.constant 0 : i32
    return %arg0, %c0_i32, %c0_i32_0 : i32, i32, i32
  }
  func.func @transform_4(%arg0: i32) -> (i32, i32, i32) {
    %c0_i32 = arith.constant 0 : i32
    %c0_i32_0 = arith.constant 0 : i32
    %c0_i32_1 = arith.constant 0 : i32
    return %arg0, %c0_i32, %c0_i32_0 : i32, i32, i32
  }
}

</mosaic_0001>

<bundles_post_ra>
// kernel: tpu_custom_call.1
= control target key start
LH: loop header
LB: loop body
LE: loop exit
PB: predicated region body
PF: predicated region fallthrough
CT: control target
= control target key end

     0   :  { %10 = vsyncpa [#allocation3], 0  ;;  %s483_s0 = inlined_call_operand.hbm [shape: f32[8,32], index: 0, kind: input, shape index: {}]   ;;  %s484_s1 = inlined_call_operand.hbm [shape: bf16[32,256], index: 1, kind: input, shape index: {}]   ;;  %s485_s2 = inlined_call_operand.hbm [shape: bf16[8,256], index: 2, kind: output, shape index: {0}]   ;;  %s486_s3 = inlined_call_operand.hbm [shape: f32[1,1,256], index: 3, kind: output, shape index: {1}]   ;;  %s487_s4 = inlined_call_operand.hbm [shape: f32[1,1,256], index: 4, kind: output, shape index: {2}]  }
   0x1   :  { %11 = vsyncpa [#allocation6], 0 }
   0x2   :  { %12 = vsyncpa [#allocation4], 0 }
   0x3   :  { %13 = vsyncpa [#allocation9], 0  ;;  %s374_s15 = smov [#allocation2]   ;;  %s375_s17 = smov [#allocation5]  }
   0x4   :  { %s20_s16 = sshll.u32 %s374_s15, 4  ;;  %s29_s18 = sshll.u32 %s375_s17, 4  ;;  %s21_s16 = int_to_ptr.vmem [resolvable:$true] %s20_s16  ;;  %s408_s18 = int_to_ptr.vmem [resolvable:$true] %s29_s18 }
   0x5   :  { %s256_s21 = scalar_lea.hbm %s483_s0, 128 }
   0x6   :  { %p257_p0 = scmp.ne.s32.totalorder %s483_s0, %s256_s21  ;;  %p260_p1 = scmp.lt.u32.totalorder %s256_s21, %s483_s0 }
   0x8   :  { %p262_p2 = pnand %p260_p1, %p257_p0 }
   0xa   :  { %265 = shalt.err (!%p262_p2)
}
   0xb   :  { %s266_s26 = scalar_lea.vmem %s21_s16, 128  ;;  %p271_p4 = scmp.lt.s32.totalorder %s21_s16, %s21_s16 }
   0xc   :  { %p267_p3 = scmp.ne.s32.totalorder %s21_s16, %s266_s26  ;;  %p272_p5 = scmp.lt.s32.totalorder %s266_s26, %s266_s26 }
   0xe   :  { %p273_p6 = por %p272_p5, %p271_p4 }
  0x10   :  { %p274_p7 = pnand %p273_p6, %p267_p3 }
  0x12   :  { %277 = shalt.err (!%p274_p7)
}
  0x13   :  { %23 = dma.hbm_to_vmem [thread:$0]  %s483_s0, 128, %s21_s16, [#allocation3]  }
  0x14   :  { %s278_s5 = scalar_lea.hbm %s484_s1, 512 }
  0x15   :  { %p279_p8 = scmp.ne.s32.totalorder %s484_s1, %s278_s5  ;;  %p282_p9 = scmp.lt.u32.totalorder %s278_s5, %s484_s1 }
  0x17   :  { %p284_p10 = pnand %p282_p9, %p279_p8 }
  0x19   :  { %287 = shalt.err (!%p284_p10)
}
  0x1a   :  { %s288_s10 = scalar_lea.vmem %s408_s18, 512  ;;  %p293_p12 = scmp.lt.s32.totalorder %s408_s18, %s408_s18 }
  0x1b   :  { %p289_p11 = scmp.ne.s32.totalorder %s408_s18, %s288_s10  ;;  %p294_p13 = scmp.lt.s32.totalorder %s288_s10, %s288_s10 }
  0x1d   :  { %p295_p0 = por %p294_p13, %p293_p12 }
  0x1f   :  { %p296_p1 = pnand %p295_p0, %p289_p11 }
  0x21   :  { %299 = shalt.err (!%p296_p1)
}
  0x22   :  { %s376_s0 = smov 128   ;;  %s377_s11 = smov 8  }
  0x23   :  { %35 = dma.hbm_to_vmem [thread:$0]  %s484_s1, 512, %s408_s18, [#allocation6], %s376_s0, %s376_s0, %s377_s11  }
  0x24   :  { %366 = dma.done.wait [#allocation3], 128  }
  0x25   :  { %367 = vsyncadd [#allocation3], 4294967168 }
  0x26   :  { %368 = dma.done.wait [#allocation6], 512  }
  0x27   :  { %369 = vsyncadd [#allocation6], 4294966784  ;;  %v378_v0 = vmov 0   ;;  %v250_v1 = vld [vmem:[#allocation5 + $0x4] ss:$8 sps:$4 sm:$0xff]   ;;  %v43_v5 = vld [vmem:[#allocation2] sm:$0xff]  ;;  %v141_v22 = vlaneseq }
  0x28   :  { %105 = vmatprep.mubr.bf16.mxu0 %v378_v0  ;;  %v252_v2 = vld [vmem:[#allocation5] ss:$8 sps:$4 sm:$0xff]   ;;  %73 = vmatprep.subr.bf16.mxu0 %v250_v1  ;;  %v253_v3 = vld [vmem:[#allocation5 + $0x14] ss:$8 sps:$4 sm:$0xff]   ;;  %v255_v4 = vld [vmem:[#allocation5 + $0x10] ss:$8 sps:$4 sm:$0xff]   ;;  %v44_v6 = vpack.c.bf16 %v43_v5, %v43_v5 }
  0x29   :  { %74 = vmatpush1.bf16.msra.mxu0 %v252_v2  ;;  %vm69_vm0 = vcmask 261120   ;;  %s379_s14 = smov [#allocation7]   ;;  %v380_v20 = vmov 1966171168  }
  0x2a   :  { %75 = vmatprep.subr.bf16.mxu0 %v253_v3  ;;  %s197_s1 = sshll.u32 %s379_s14, 4  ;;  %v139_v21 = vunpack.c.l.s4 %v380_v20  ;;  %s198_s1 = int_to_ptr.vmem [resolvable:$true] %s197_s1 }
  0x2b   :  { %s300_s15 = scalar_lea.vmem %s198_s1, 128  ;;  %p305_p3 = scmp.lt.s32.totalorder %s198_s1, %s198_s1 }
  0x2c   :  { %p301_p2 = scmp.ne.s32.totalorder %s198_s1, %s300_s15  ;;  %p306_p4 = scmp.lt.s32.totalorder %s300_s15, %s300_s15 }
  0x2d   :  { %76 = vmatpush1.bf16.msra.mxu0 %v255_v4 }
  0x2e   :  { %p307_p5 = por %p306_p4, %p305_p3 }
  0x30   :  { %238 = vmatmul.mubr.msk.bf16.vlgmr.msra.gmra.mrb[0].mxu0 %vm69_vm0, %v44_v6  ;;  %p308_p6 = pnand %p307_p5, %p301_p2 }
 0x103   :  { %v107_v7 = vpop.f32.mrb[0].mxu0 }
 0x104   :  { %v123_v8 = vrot.slane %v107_v7, 4  ;;  %v158_v9 = vmul.f32 %v107_v7, %v107_v7  ;;  %v109_v10 = vpop.f32.mrb[1].mxu0 }
 0x105   :  { %v129_v11 = vrot.slane %v109_v10, 4  ;;  %v159_v12 = vmul.f32 %v109_v10, %v109_v10  ;;  %v111_v13 = vpop.f32.mrb[2].mxu0  ;;  %v240_v14 = vpack.c.bf16 %v109_v10, %v107_v7 }
 0x106   :  { %v124_v15 = vadd.f32 %v123_v8, %v107_v7  ;;  %v160_v16 = vrot.slane %v158_v9, 4  ;;  %v112_v17 = vpop.f32.mrb[3].mxu0 }
 0x107   :  { %v130_v18 = vadd.f32 %v129_v11, %v109_v10  ;;  %v166_v19 = vrot.slane %v159_v12, 4  ;;  %122 = vst [vmem:[#allocation7] sm:$0xff] %v240_v14 }
 0x108   :  { %v125_v23 = vrot.slane %v124_v15, 2  ;;  %v161_v24 = vadd.f32 %v160_v16, %v158_v9 }
 0x109   :  { %311 = shalt.err (!%p308_p6)
}
 0x10a   :  { %s312_s18 = scalar_lea.hbm %s485_s2, 128 }
 0x10b   :  { %p313_p7 = scmp.ne.s32.totalorder %s485_s2, %s312_s18  ;;  %p316_p8 = scmp.lt.u32.totalorder %s312_s18, %s485_s2 }
 0x10d   :  { %p318_p9 = pnand %p316_p8, %p313_p7 }
 0x10f   :  { %321 = shalt.err (!%p318_p9)
}
 0x110   :  { %200 = dma.vmem_to_hbm [thread:$0]  %s198_s1, 128, %s485_s2, [#allocation4]   ;;  %v131_v25 = vrot.slane %v130_v18, 2  ;;  %v167_v26 = vadd.f32 %v166_v19, %v159_v12  ;;  %v126_v27 = vadd.f32 %v125_v23, %v124_v15  ;;  %v162_v28 = vrot.slane %v161_v24, 2 }
 0x111   :  { %v140_v31 = vunpack.c.0.s8 %v139_v21  ;;  %v142_v32 = vshrl.u32 %v141_v22, 7  ;;  %s381_s2 = smov [#allocation8]   ;;  %vm451_vm1 = vcmp.lt.s32.totalorder %v141_v22, 256  ;;  %s382_s26 = smov [#allocation10]  }
 0x112   :  { %v132_v29 = vadd.f32 %v131_v25, %v130_v18  ;;  %v168_v30 = vrot.slane %v167_v26, 2  ;;  %v127_v33 = vrot.slane %v126_v27, 1  ;;  %v163_v34 = vadd.f32 %v162_v28, %v161_v24  ;;  %s207_s25 = sshll.u32 %s381_s2, 4  ;;  %s217_s27 = sshll.u32 %s382_s26, 4  ;;  %s208_s25 = int_to_ptr.vmem [resolvable:$true] %s207_s25  ;;  %s218_s27 = int_to_ptr.vmem [resolvable:$true] %s217_s27 }
 0x113   :  { %v143_v41 = vsub.s32 %v140_v31, %v142_v32  ;;  %s322_s28 = scalar_lea.vmem %s208_s25, 32  ;;  %p327_p11 = scmp.lt.s32.totalorder %s208_s25, %s208_s25 }
 0x114   :  { %v133_v35 = vrot.slane %v132_v29, 1  ;;  %v169_v36 = vadd.f32 %v168_v30, %v167_v26  ;;  %v128_v37 = vadd.f32 %v127_v33, %v126_v27  ;;  %v164_v38 = vrot.slane %v163_v34, 1  ;;  %p323_p10 = scmp.ne.s32.totalorder %s208_s25, %s322_s28  ;;  %p328_p12 = scmp.lt.s32.totalorder %s322_s28, %s322_s28 }
 0x116   :  { %v134_v39 = vadd.f32 %v133_v35, %v132_v29  ;;  %v170_v40 = vrot.slane %v169_v36, 1  ;;  %v165_v42 = vadd.f32 %v164_v38, %v163_v34  ;;  %p329_p13 = por %p328_p12, %p327_p11 }
 0x118   :  { %v171_v43 = vadd.f32 %v170_v40, %v169_v36  ;;  %v137_v44 = vcombine.low %v128_v37, %v134_v39  ;;  %p330_p0 = pnand %p329_p13, %p323_p10 }
 0x11a   :  { %v144_v45 = vrot.slane %v137_v44, %v143_v41  ;;  %v174_v46 = vcombine.low %v165_v42, %v171_v43 }
 0x11c   :  { %v151_v48 = vrot.slane %v144_v45, %v143_v41  ;;  %v181_v49 = vrot.slane %v174_v46, %v143_v41 }
 0x11e   :  { %157 = vst.msk [vmem:[#allocation8] sm:$0x3] %vm451_vm1, %v151_v48  ;;  %v188_v50 = vrot.slane %v181_v49, %v143_v41 }
 0x11f   :  { %333 = shalt.err (!%p330_p0)
}
 0x120   :  { %s334_s5 = scalar_lea.hbm %s486_s3, 32 }
 0x121   :  { %p335_p1 = scmp.ne.s32.totalorder %s486_s3, %s334_s5  ;;  %p338_p2 = scmp.lt.u32.totalorder %s334_s5, %s486_s3 }
 0x123   :  { %p340_p3 = pnand %p338_p2, %p335_p1 }
 0x125   :  { %343 = shalt.err (!%p340_p3)
}
 0x126   :  { %210 = dma.vmem_to_hbm [thread:$0]  %s208_s25, 32, %s486_s3, [#allocation9]   ;;  %190 = vst.msk [vmem:[#allocation10] sm:$0x3] %vm451_vm1, %v188_v50 }
 0x127   :  { %s344_s11 = scalar_lea.vmem %s218_s27, 32  ;;  %p349_p5 = scmp.lt.s32.totalorder %s218_s27, %s218_s27 }
 0x128   :  { %p345_p4 = scmp.ne.s32.totalorder %s218_s27, %s344_s11  ;;  %p350_p6 = scmp.lt.s32.totalorder %s344_s11, %s344_s11 }
 0x12a   :  { %p351_p7 = por %p350_p6, %p349_p5 }
 0x12c   :  { %p352_p8 = pnand %p351_p7, %p345_p4 }
 0x12e   :  { %355 = shalt.err (!%p352_p8)
}
 0x12f   :  { %s356_s14 = scalar_lea.hbm %s487_s4, 32 }
 0x130   :  { %p357_p9 = scmp.ne.s32.totalorder %s487_s4, %s356_s14  ;;  %p360_p10 = scmp.lt.u32.totalorder %s356_s14, %s487_s4 }
 0x132   :  { %p362_p11 = pnand %p360_p10, %p357_p9 }
 0x134   :  { %365 = shalt.err (!%p362_p11)
}
 0x135   :  { %220 = dma.vmem_to_hbm [thread:$0]  %s218_s27, 32, %s487_s4, [#allocation9]  }
 0x136   :  { %370 = dma.done.wait [#allocation4], 128  }
 0x137   :  { %371 = vsyncadd [#allocation4], 4294967168 }
 0x138   :  { %372 = dma.done.wait [#allocation9], 64  }
 0x139   :  { %373 = vsyncadd [#allocation9], 4294967232 }
 0x13a   :  { %230 = vsyncpa [#allocation3], 1 }
 0x13b   :  { %231 = vsyncpa [#allocation6], 1 }
 0x13c   :  { %232 = vsyncpa [#allocation4], 1 }
 0x13d   :  { %233 = vsyncpa [#allocation9], 1 }

</bundles_post_ra>
